<compile_context>
chip_gen: v5e
topology: v5e:2x2
jax: 0.10.0
libtpu: 0.0.40
codegen_flags: <defaults>
</compile_context>

<pallas_src>
import jax
import jax.numpy as jnp
from jax.experimental import pallas as pl
from jax.experimental.pallas import tpu as pltpu

LANE = 128  # vreg lane width


def _round_up(n, m):
    return ((n + m - 1) // m) * m


# --------------------------------------------------------------------------
# Kernel: whole 3-layer MLP for one batch tile, weights resident in VMEM.
# --------------------------------------------------------------------------
def _mlp_kernel(x_ref, w1_ref, b1_ref, w2_ref, b2_ref, w3_ref, b3_ref, o_ref):
    # fc1 + ReLU.  x arrives fp32 and is cast to bf16 here (VPU work hidden
    # under MXU/DMA slack) rather than in a separate XLA op in the wrapper.
    x = x_ref[...].astype(jnp.bfloat16)
    h1 = jnp.dot(x, w1_ref[...], preferred_element_type=jnp.float32)
    h1 = jnp.maximum(h1 + b1_ref[...], 0.0)
    # fc2 + ReLU  (hidden padded 75 -> 128; padded lanes stay exactly zero).
    h2 = jnp.dot(h1.astype(jnp.bfloat16), w2_ref[...],
                 preferred_element_type=jnp.float32)
    h2 = jnp.maximum(h2 + b2_ref[...], 0.0)
    # fc3 (no activation; output padded 24 -> 128, padded lanes exactly zero).
    out = jnp.dot(h2.astype(jnp.bfloat16), w3_ref[...],
                  preferred_element_type=jnp.float32)
    o_ref[...] = (out + b3_ref[...]).astype(o_ref.dtype)


# --------------------------------------------------------------------------
# Tile selection
# --------------------------------------------------------------------------
def _pick_tile_b(B, tile_b_max):
    """16-aligned batch tile.  Prefers >=2 grid steps (v7x's 2nd TC) when B is
    large enough, capped by tile_b_max."""
    tile_b_max = max(16, _round_up(tile_b_max, 16))
    full = _round_up(B, 16)
    if full <= tile_b_max:
        if B >= 32:
            # Split in two so the "parallel" batch axis feeds both v7x cores.
            return _round_up(pl.cdiv(full, 2), 16)
        return full
    return tile_b_max


# --------------------------------------------------------------------------
# Wrapper
# --------------------------------------------------------------------------
def net_forward(x, packed, *, out_dim=24, tile_b_max=512):
    """Run the 3-layer MLP as a batch-tiled Pallas TPU kernel.

    x:      [B, col_len] float32 (or bf16)
    packed: dict from pack_params(): bf16 weights [in, out_padded],
            fp32 biases [1, out_padded] (hidden/output padded to 128 lanes)
    returns: [B, out_dim] float32
    """
    w1, b1 = packed["w1"], packed["b1"]
    w2, b2 = packed["w2"], packed["b2"]
    w3, b3 = packed["w3"], packed["b3"]
    B, col_len = x.shape
    out_pad_dim = w3.shape[1]

    tile_b = _pick_tile_b(B, tile_b_max)

    # Only pad when the batch is smaller than a single tile (tiny copy).  For
    # B >= tile_b the ragged last block is handled by Pallas: it reads
    # undefined tail rows whose (garbage) outputs are discarded by the [:B]
    # slice below and never influence valid rows (rows are independent).
    if B < tile_b:
        x = jnp.pad(x, ((0, tile_b - B), (0, 0)))
        B_eff = tile_b
    else:
        B_eff = B

    grid = (pl.cdiv(B_eff, tile_b),)

    def resident(arr):
        # Constant index_map: DMA'd once, stays VMEM-resident across the grid.
        return pl.BlockSpec(arr.shape, lambda i: (0, 0))

    # Advisory cost model so XLA can overlap the call with neighbours.
    flops = 2 * B_eff * (col_len * w1.shape[1]
                         + w1.shape[1] * w2.shape[1]
                         + w2.shape[1] * w3.shape[1])
    bytes_accessed = (
        B_eff * col_len * x.dtype.itemsize            # x read
        + B_eff * out_pad_dim * 2                     # bf16 output write
        + sum(int(a.size) * a.dtype.itemsize for a in (w1, b1, w2, b2, w3, b3)))

    out_pad = pl.pallas_call(
        _mlp_kernel,
        out_shape=jax.ShapeDtypeStruct((B_eff, out_pad_dim), jnp.bfloat16),
        grid=grid,
        in_specs=[
            pl.BlockSpec((tile_b, col_len), lambda i: (i, 0)),  # x tile
            resident(w1), resident(b1),
            resident(w2), resident(b2),
            resident(w3), resident(b3),
        ],
        out_specs=pl.BlockSpec((tile_b, out_pad_dim), lambda i: (i, 0)),
        compiler_params=pltpu.CompilerParams(
            dimension_semantics=("parallel",),        # shards batch on v7x TCs
            vmem_limit_bytes=32 * 1024 * 1024,        # > v5e's 16 MiB default
        ),
        cost_estimate=pl.CostEstimate(
            flops=int(flops), transcendentals=0,
            bytes_accessed=int(bytes_accessed)),
    )(x, w1, b1, w2, b2, w3, b3)

    # Upcast + slice the padded bf16 output to fp32 [B, out_dim] (tiny).
    return out_pad[:B, :out_dim].astype(jnp.float32)


# --------------------------------------------------------------------------
# Parameter init (PyTorch nn.Linear-style) and lane-dense packing
# --------------------------------------------------------------------------
def init_params(key, col_len, hidd_dim=512, hidden_dim=75, out_dim=24):
    """Uniform in [-1/sqrt(fan_in), 1/sqrt(fan_in)], weights stored [in, out]."""
    ks = jax.random.split(key, 6)

    def lin(kw, kb, fan_in, fan_out):
        bound = 1.0 / jnp.sqrt(jnp.float32(fan_in))
        w = jax.random.uniform(kw, (fan_in, fan_out), jnp.float32, -bound, bound)
        b = jax.random.uniform(kb, (1, fan_out), jnp.float32, -bound, bound)
        return w, b

    w1, b1 = lin(ks[0], ks[1], col_len, hidd_dim)
    w2, b2 = lin(ks[2], ks[3], hidd_dim, hidden_dim)
    w3, b3 = lin(ks[4], ks[5], hidden_dim, out_dim)
    return {"w1": w1, "b1": b1, "w2": w2, "b2": b2, "w3": w3, "b3": b3}


def pack_params(params):
    """Zero-pad the 75-wide hidden and 24-wide output to 128 lanes (exact),
    cast weights to bf16 (fp32 accumulation happens in-kernel), biases fp32."""
    hid = params["w2"].shape[1]          # 75
    out = params["w3"].shape[1]          # 24
    hid_p = _round_up(hid, LANE)         # 128
    out_p = _round_up(out, LANE)         # 128

    w1 = params["w1"].astype(jnp.bfloat16)
    b1 = params["b1"].astype(jnp.float32)
    w2 = jnp.pad(params["w2"], ((0, 0), (0, hid_p - hid))).astype(jnp.bfloat16)
    b2 = jnp.pad(params["b2"], ((0, 0), (0, hid_p - hid))).astype(jnp.float32)
    w3 = jnp.pad(params["w3"], ((0, hid_p - hid), (0, out_p - out))).astype(jnp.bfloat16)
    b3 = jnp.pad(params["b3"], ((0, 0), (0, out_p - out))).astype(jnp.float32)
    return {"w1": w1, "b1": b1, "w2": w2, "b2": b2, "w3": w3, "b3": b3}


# --------------------------------------------------------------------------
# Self-check: pure-JAX reference that mirrors the kernel's precision path
# (bf16 dot inputs, fp32 accumulation/elementwise, bf16 storage, fp32 upcast).
# --------------------------------------------------------------------------
def _ref_forward(x, packed, out_dim=24):
    h1 = jnp.dot(x.astype(jnp.bfloat16), packed["w1"],
                 preferred_element_type=jnp.float32) + packed["b1"]
    h1 = jnp.maximum(h1, 0.0)
    h2 = jnp.dot(h1.astype(jnp.bfloat16), packed["w2"],
                 preferred_element_type=jnp.float32) + packed["b2"]
    h2 = jnp.maximum(h2, 0.0)
    out = jnp.dot(h2.astype(jnp.bfloat16), packed["w3"],
                  preferred_element_type=jnp.float32) + packed["b3"]
    return out.astype(jnp.bfloat16).astype(jnp.float32)[:, :out_dim]


if __name__ == "__main__":
    col_len = 32  # small feature width consistent with the module (case 1)

    key = jax.random.PRNGKey(0)
    k_x1, k_p, k_x2, k_x3 = jax.random.split(key, 4)

    params = init_params(k_p, col_len)
    packed = pack_params(params)

    # 1) Small batch: single (padded) tile.
    x1 = jax.random.normal(k_x1, (8, col_len), jnp.float32)
    out1 = jax.block_until_ready(net_forward(x1, packed))
    ref1 = _ref_forward(x1, packed)
    assert out1.shape == (8, 24), out1.shape
    assert jnp.allclose(out1, ref1, atol=2e-2, rtol=2e-2), (
        float(jnp.max(jnp.abs(out1 - ref1))))

    # 2) Ragged multi-tile grid: B=40, tile=32 -> grid=(2,), ragged last block.
    x2 = jax.random.normal(k_x2, (40, col_len), jnp.float32)
    out2 = jax.block_until_ready(net_forward(x2, packed, tile_b_max=32))
    ref2 = _ref_forward(x2, packed)
    assert out2.shape == (40, 24), out2.shape
    assert jnp.allclose(out2, ref2, atol=2e-2, rtol=2e-2), (
        float(jnp.max(jnp.abs(out2 - ref2))))

    # 3) Even two-way split (v7x two-TC path): B=64 -> tile=32, grid=(2,).
    x3 = jax.random.normal(k_x3, (64, col_len), jnp.float32)
    out3 = jax.block_until_ready(net_forward(x3, packed))
    ref3 = _ref_forward(x3, packed)
    assert out3.shape == (64, 24), out3.shape
    assert jnp.allclose(out3, ref3, atol=2e-2, rtol=2e-2), (
        float(jnp.max(jnp.abs(out3 - ref3))))

    print("KERNEL_OK")
</pallas_src>

<mosaic_0001>
module attributes {stable_mosaic.version = 11 : i64} {
  func.func @_mlp_kernel(%arg0: i32, %arg1: memref<16x32xf32, #tpu.memory_space<vmem>>, %arg2: memref<32x512xbf16, #tpu.memory_space<vmem>>, %arg3: memref<1x512xf32, #tpu.memory_space<vmem>>, %arg4: memref<512x128xbf16, #tpu.memory_space<vmem>>, %arg5: memref<1x128xf32, #tpu.memory_space<vmem>>, %arg6: memref<128x128xbf16, #tpu.memory_space<vmem>>, %arg7: memref<1x128xf32, #tpu.memory_space<vmem>>, %arg8: memref<16x128xbf16, #tpu.memory_space<vmem>>) attributes {dimension_semantics = [#tpu.dimension_semantics<parallel>], iteration_bounds = array<i64: 1>, scalar_prefetch = 0 : i64, scratch_operands = 0 : i64, tpu.core_type = #tpu.core_type<tc>, window_params = [{transform_indices = @transform_0, window_bounds = array<i64: 16, 32>}, {pipeline_mode = #tpu.pipeline_mode<synchronous>, transform_indices = @transform_1, window_bounds = array<i64: 32, 512>}, {pipeline_mode = #tpu.pipeline_mode<synchronous>, transform_indices = @transform_2, window_bounds = array<i64: 1, 512>}, {pipeline_mode = #tpu.pipeline_mode<synchronous>, transform_indices = @transform_3, window_bounds = array<i64: 512, 128>}, {pipeline_mode = #tpu.pipeline_mode<synchronous>, transform_indices = @transform_4, window_bounds = array<i64: 1, 128>}, {pipeline_mode = #tpu.pipeline_mode<synchronous>, transform_indices = @transform_5, window_bounds = array<i64: 128, 128>}, {pipeline_mode = #tpu.pipeline_mode<synchronous>, transform_indices = @transform_6, window_bounds = array<i64: 1, 128>}, {transform_indices = @transform_7, window_bounds = array<i64: 16, 128>}]} {
    %c0 = arith.constant 0 : index
    %c0_0 = arith.constant 0 : index
    %0 = vector.load %arg1[%c0, %c0_0] : memref<16x32xf32, #tpu.memory_space<vmem>>, vector<16x32xf32>
    %1 = arith.truncf %0 : vector<16x32xf32> to vector<16x32xbf16>
    %c0_1 = arith.constant 0 : index
    %c0_2 = arith.constant 0 : index
    %2 = vector.load %arg2[%c0_1, %c0_2] : memref<32x512xbf16, #tpu.memory_space<vmem>>, vector<32x512xbf16>
    %cst = arith.constant dense<0.000000e+00> : vector<16x512xf32>
    %3 = tpu.matmul %1, %2, %cst {dimension_numbers = #tpu.dot_dimension_numbers<[1], [0], [0], [1], [0, 0, 1, 1], [], []>} : vector<16x32xbf16>, vector<32x512xbf16>, vector<16x512xf32> -> vector<16x512xf32>
    %c0_3 = arith.constant 0 : index
    %c0_4 = arith.constant 0 : index
    %4 = vector.load %arg3[%c0_3, %c0_4] : memref<1x512xf32, #tpu.memory_space<vmem>>, vector<1x512xf32>
    %5 = vector.broadcast %4 : vector<1x512xf32> to vector<16x512xf32>
    %6 = arith.addf %3, %5 : vector<16x512xf32>
    %cst_5 = arith.constant 0.000000e+00 : f32
    %7 = vector.broadcast %cst_5 : f32 to vector<16x512xf32>
    %8 = arith.maximumf %6, %7 : vector<16x512xf32>
    %9 = arith.truncf %8 : vector<16x512xf32> to vector<16x512xbf16>
    %c0_6 = arith.constant 0 : index
    %c0_7 = arith.constant 0 : index
    %10 = vector.load %arg4[%c0_6, %c0_7] : memref<512x128xbf16, #tpu.memory_space<vmem>>, vector<512x128xbf16>
    %cst_8 = arith.constant dense<0.000000e+00> : vector<16x128xf32>
    %11 = tpu.matmul %9, %10, %cst_8 {dimension_numbers = #tpu.dot_dimension_numbers<[1], [0], [0], [1], [0, 0, 1, 1], [], []>} : vector<16x512xbf16>, vector<512x128xbf16>, vector<16x128xf32> -> vector<16x128xf32>
    %c0_9 = arith.constant 0 : index
    %c0_10 = arith.constant 0 : index
    %12 = vector.load %arg5[%c0_9, %c0_10] : memref<1x128xf32, #tpu.memory_space<vmem>>, vector<1x128xf32>
    %13 = vector.broadcast %12 : vector<1x128xf32> to vector<16x128xf32>
    %14 = arith.addf %11, %13 : vector<16x128xf32>
    %cst_11 = arith.constant 0.000000e+00 : f32
    %15 = vector.broadcast %cst_11 : f32 to vector<16x128xf32>
    %16 = arith.maximumf %14, %15 : vector<16x128xf32>
    %17 = arith.truncf %16 : vector<16x128xf32> to vector<16x128xbf16>
    %c0_12 = arith.constant 0 : index
    %c0_13 = arith.constant 0 : index
    %18 = vector.load %arg6[%c0_12, %c0_13] : memref<128x128xbf16, #tpu.memory_space<vmem>>, vector<128x128xbf16>
    %cst_14 = arith.constant dense<0.000000e+00> : vector<16x128xf32>
    %19 = tpu.matmul %17, %18, %cst_14 {dimension_numbers = #tpu.dot_dimension_numbers<[1], [0], [0], [1], [0, 0, 1, 1], [], []>} : vector<16x128xbf16>, vector<128x128xbf16>, vector<16x128xf32> -> vector<16x128xf32>
    %c0_15 = arith.constant 0 : index
    %c0_16 = arith.constant 0 : index
    %20 = vector.load %arg7[%c0_15, %c0_16] : memref<1x128xf32, #tpu.memory_space<vmem>>, vector<1x128xf32>
    %21 = vector.broadcast %20 : vector<1x128xf32> to vector<16x128xf32>
    %22 = arith.addf %19, %21 : vector<16x128xf32>
    %23 = arith.truncf %22 : vector<16x128xf32> to vector<16x128xbf16>
    %c0_17 = arith.constant 0 : index
    %c0_18 = arith.constant 0 : index
    %24 = vector.load %arg8[%c0_17, %c0_18] : memref<16x128xbf16, #tpu.memory_space<vmem>>, vector<16x128xbf16>
    tpu.vector_store %arg8[%c0_17, %c0_18], %23 {strides = array<i32>} : memref<16x128xbf16, #tpu.memory_space<vmem>>, vector<16x128xbf16>,
    return
  }
  func.func @transform_0(%arg0: i32) -> (i32, i32) {
    %c0_i32 = arith.constant 0 : i32
    %c0_i32_0 = arith.constant 0 : i32
    return %arg0, %c0_i32 : i32, i32
  }
  func.func @transform_1(%arg0: i32) -> (i32, i32) {
    %c0_i32 = arith.constant 0 : i32
    %c0_i32_0 = arith.constant 0 : i32
    %c0_i32_1 = arith.constant 0 : i32
    return %c0_i32, %c0_i32_0 : i32, i32
  }
  func.func @transform_2(%arg0: i32) -> (i32, i32) {
    %c0_i32 = arith.constant 0 : i32
    %c0_i32_0 = arith.constant 0 : i32
    %c0_i32_1 = arith.constant 0 : i32
    return %c0_i32, %c0_i32_0 : i32, i32
  }
  func.func @transform_3(%arg0: i32) -> (i32, i32) {
    %c0_i32 = arith.constant 0 : i32
    %c0_i32_0 = arith.constant 0 : i32
    %c0_i32_1 = arith.constant 0 : i32
    return %c0_i32, %c0_i32_0 : i32, i32
  }
  func.func @transform_4(%arg0: i32) -> (i32, i32) {
    %c0_i32 = arith.constant 0 : i32
    %c0_i32_0 = arith.constant 0 : i32
    %c0_i32_1 = arith.constant 0 : i32
    return %c0_i32, %c0_i32_0 : i32, i32
  }
  func.func @transform_5(%arg0: i32) -> (i32, i32) {
    %c0_i32 = arith.constant 0 : i32
    %c0_i32_0 = arith.constant 0 : i32
    %c0_i32_1 = arith.constant 0 : i32
    return %c0_i32, %c0_i32_0 : i32, i32
  }
  func.func @transform_6(%arg0: i32) -> (i32, i32) {
    %c0_i32 = arith.constant 0 : i32
    %c0_i32_0 = arith.constant 0 : i32
    %c0_i32_1 = arith.constant 0 : i32
    return %c0_i32, %c0_i32_0 : i32, i32
  }
  func.func @transform_7(%arg0: i32) -> (i32, i32) {
    %c0_i32 = arith.constant 0 : i32
    %c0_i32_0 = arith.constant 0 : i32
    return %arg0, %c0_i32 : i32, i32
  }
}

</mosaic_0001>

<bundles_post_ra>
// kernel: tpu_custom_call.1
= control target key start
LH: loop header
LB: loop body
LE: loop exit
PB: predicated region body
PF: predicated region fallthrough
CT: control target
= control target key end

     0   :  { %12 = vsyncpa [#allocation3], 0  ;;  %s1167_s0 = inlined_call_operand.hbm [shape: f32[16,32], index: 0, kind: input, shape index: {}]   ;;  %s1168_s1 = inlined_call_operand.hbm [shape: bf16[32,512], index: 1, kind: input, shape index: {}]   ;;  %s1169_s2 = inlined_call_operand.hbm [shape: f32[1,512], index: 2, kind: input, shape index: {}]   ;;  %s1170_s3 = inlined_call_operand.hbm [shape: bf16[512,128], index: 3, kind: input, shape index: {}]   ;;  %s1171_s4 = inlined_call_operand.vmem [shape: f32[1,128], index: 4, kind: input, shape index: {}]   ;;  %s1172_s5 = inlined_call_operand.hbm [shape: bf16[128,128], index: 5, kind: input, shape index: {}]   ;;  %s1173_s6 = inlined_call_operand.vmem [shape: f32[1,128], index: 6, kind: input, shape index: {}]   ;;  %s1174_s7 = inlined_call_operand.hbm [shape: bf16[16,128], index: 7, kind: output, shape index: {}]  }
   0x1   :  { %13 = vsyncpa [#allocation6], 0 }
   0x2   :  { %14 = vsyncpa [#allocation9], 0  ;;  %s33_s26 = sshll.u32 %s1168_s1, 4  ;;  %s34_s26 = int_to_ptr.hbm [resolvable:$true] %s33_s26 }
   0x3   :  { %15 = vsyncpa [#allocation4], 0  ;;  %s1078_s27 = smov [#allocation5]   ;;  %s57_s8 = sshll.u32 %s1170_s3, 4  ;;  %s58_s8 = int_to_ptr.hbm [resolvable:$true] %s57_s8 }
   0x4   :  { %s35_s28 = sshll.u32 %s1078_s27, 4  ;;  %s1079_s9 = smov 256   ;;  %s36_s28 = int_to_ptr.vmem [resolvable:$true] %s35_s28 }
   0x5   :  { %s1080_s10 = smov 16   ;;  %s1081_s11 = smov [#allocation8]  }
   0x6   :  { %41 = dma.hbm_to_vmem [thread:$0]  %s34_s26, 1024, %s36_s28, [#allocation6], %s1079_s9, %s1079_s9, %s1080_s10  }
   0x7   :  { %s59_s12 = sshll.u32 %s1081_s11, 4  ;;  %s1082_s13 = smov 64   ;;  %s60_s12 = int_to_ptr.vmem [resolvable:$true] %s59_s12 }
   0x8   :  { %s1083_s14 = smov 4   ;;  %s20_s16 = sshll.u32 %s1167_s0, 4  ;;  %s21_s16 = int_to_ptr.hbm [resolvable:$true] %s20_s16 }
   0x9   :  { %65 = dma.hbm_to_vmem [thread:$0]  %s58_s8, 4096, %s60_s12, [#allocation9], %s1082_s13, %s1082_s13, %s1083_s14  }
   0xa   :  { %s1084_s17 = smov [#allocation2]   ;;  %s47_s20 = sshll.u32 %s1169_s2, 4  ;;  %s48_s20 = int_to_ptr.hbm [resolvable:$true] %s47_s20 }
   0xb   :  { %s22_s3 = sshll.u32 %s1084_s17, 4  ;;  %s1085_s21 = smov 128   ;;  %s23_s3 = int_to_ptr.vmem [resolvable:$true] %s22_s3 }
   0xc   :  { %s1086_s22 = smov 8   ;;  %s1087_s23 = smov [#allocation7]  }
   0xd   :  { %28 = dma.hbm_to_vmem [thread:$0]  %s21_s16, 256, %s23_s3, [#allocation3], %s1085_s21, %s1085_s21, %s1086_s22  }
   0xe   :  { %s49_s24 = sshll.u32 %s1087_s23, 4  ;;  %s72_s27 = sshll.u32 %s1172_s5, 4  ;;  %s50_s24 = int_to_ptr.vmem [resolvable:$true] %s49_s24  ;;  %s73_s27 = int_to_ptr.hbm [resolvable:$true] %s72_s27 }
   0xf   :  { %52 = dma.hbm_to_vmem [thread:$0]  %s48_s20, 64, %s50_s24, [#allocation6]  }
  0x10   :  { %s1088_s0 = smov [#allocation10]  }
  0x11   :  { %s74_s28 = sshll.u32 %s1088_s0, 4  ;;  %s75_s28 = int_to_ptr.vmem [resolvable:$true] %s74_s28 }
  0x12   :  { %80 = dma.hbm_to_vmem [thread:$0]  %s73_s27, 1024, %s75_s28, [#allocation9], %s1082_s13, %s1082_s13, %s1083_s14  }
  0x13   :  { %1070 = dma.done.wait [#allocation3], 256  }
  0x14   :  { %1071 = vsyncadd [#allocation3], 4294967040 }
  0x15   :  { %1072 = dma.done.wait [#allocation6], 1088  }
  0x16   :  { %1073 = vsyncadd [#allocation6], 4294966208 }
  0x17   :  { %1074 = dma.done.wait [#allocation9], 5120  }
  0x18   :  { %1075 = vsyncadd [#allocation9], 4294962176  ;;  %v681_v0 = vld [vmem:[#allocation5 + $0x20] sm:$0xf]  ;;  %v865_v1 = vld [vmem:[#allocation5 + $0x2c] sm:$0xf0] }
  0x19   :  { %v689_v2 = vld [vmem:[#allocation5 + $0x28] sm:$0xf]  ;;  %v682_v3 = vor.u32 %v865_v1, %v681_v0  ;;  %v866_v4 = vld [vmem:[#allocation5 + $0x34] sm:$0xf0]  ;;  %v864_v5 = vld [vmem:[#allocation5 + $0x2c] sm:$0xf] }
  0x1a   :  { %v691_v6 = vld [vmem:[#allocation5 + $0x38] sm:$0xf0]  ;;  %v690_v7 = vor.u32 %v866_v4, %v689_v2  ;;  %v665_v9 = vld [vmem:[#allocation5] sm:$0xf]  ;;  %v861_v10 = vld [vmem:[#allocation5 + $0xc] sm:$0xf0] }
  0x1b   :  { %v694_v8 = vor.u32 %v864_v5, %v691_v6  ;;  %v673_v11 = vld [vmem:[#allocation5 + $0x8] sm:$0xf]  ;;  %175 = vmatpush.bf16.msra.mxu1 %v682_v3  ;;  %v666_v12 = vor.u32 %v861_v10, %v665_v9  ;;  %v862_v13 = vld [vmem:[#allocation5 + $0x14] sm:$0xf0]  ;;  %v860_v14 = vld [vmem:[#allocation5 + $0xc] sm:$0xf] }
  0x1c   :  { %v675_v15 = vld [vmem:[#allocation5 + $0x18] sm:$0xf0]  ;;  %203 = vmatpush.bf16.msra.mxu2 %v690_v7  ;;  %v674_v16 = vor.u32 %v862_v13, %v673_v11  ;;  %v104_v18 = vld [vmem:[#allocation2] sm:$0xff]  ;;  %v863_v20 = vld [vmem:[#allocation5 + $0x24] sm:$0xf]  ;;  %vm165_vm0 = vcmask 261120  }
  0x1d   :  { %217 = vmatpush.bf16.msra.mxu3 %v694_v8  ;;  %v678_v17 = vor.u32 %v860_v14, %v675_v15  ;;  %v105_v19 = vld [vmem:[#allocation2 + $0x8] sm:$0xff]  ;;  %v683_v21 = vld [vmem:[#allocation5 + $0x30] sm:$0xf0]  ;;  %v859_v22 = vld [vmem:[#allocation5 + $0x4] sm:$0xf]  ;;  %s1089_s30 = smov [#allocation11]  }
  0x1e   :  { %v106_v23 = vpack.c.bf16 %v105_v19, %v104_v18  ;;  %v686_v24 = vor.u32 %v863_v20, %v683_v21  ;;  %v667_v25 = vld [vmem:[#allocation5 + $0x10] sm:$0xf0]  ;;  %v874_v26 = vld [vmem:[#allocation8 + $0x38] sm:$0xff]  ;;  %v872_v33 = vld [vmem:[#allocation8 + $0x28] sm:$0xff]  ;;  %s646_s8 = sshll.u32 %s1089_s30, 4  ;;  %s648_s11 = sshll.u32 %s1174_s7, 4  ;;  %s647_s8 = int_to_ptr.vmem [resolvable:$true] %s646_s8  ;;  %s649_s11 = int_to_ptr.hbm [resolvable:$true] %s648_s11 }
  0x1f   :  { %v890_v27 = vld [vmem:[#allocation8 + $0xb8] sm:$0xff]  ;;  %176 = vmatpush.bf16.msra.mxu1 %v666_v12  ;;  %v670_v29 = vor.u32 %v859_v22, %v667_v25  ;;  %497 = vmatpush.bf16.msra.mxu0 %v874_v26  ;;  %v873_v30 = vld [vmem:[#allocation8 + $0x30] sm:$0xff]  ;;  %v888_v34 = vld [vmem:[#allocation8 + $0xa8] sm:$0xff] }
  0x20   :  { %204 = vmatpush.bf16.msra.mxu2 %v674_v16  ;;  %v898_v28 = vld [vmem:[#allocation8 + $0xf8] sm:$0xff]  ;;  %v889_v31 = vld [vmem:[#allocation8 + $0xb0] sm:$0xff]  ;;  %v896_v35 = vld [vmem:[#allocation8 + $0xe8] sm:$0xff] }
  0x21   :  { %218 = vmatpush.bf16.msra.mxu3 %v678_v17  ;;  %v897_v32 = vld [vmem:[#allocation8 + $0xf0] sm:$0xff]  ;;  %v871_v36 = vld [vmem:[#allocation8 + $0x20] sm:$0xff]  ;;  %v870_v37 = vld [vmem:[#allocation8 + $0x18] sm:$0xff] }
  0x22   :  { %695 = vmatmul.msk.bf16.vlgmr.msra.gmra.mxu1 %vm165_vm0, %v106_v23  ;;  %v882_v38 = vld [vmem:[#allocation8 + $0x78] sm:$0xff]  ;;  %v887_v39 = vld [vmem:[#allocation8 + $0xa0] sm:$0xff]  ;;  %v869_v41 = vld [vmem:[#allocation8 + $0x10] sm:$0xff] }
  0x23   :  { %189 = vmatpush.bf16.msrb.mxu1 %v686_v24  ;;  %697 = vmatmul.msk.bf16.vlgmr.msra.gmra.mxu2 %vm165_vm0, %v106_v23  ;;  %v895_v40 = vld [vmem:[#allocation8 + $0xe0] sm:$0xff]  ;;  %v881_v42 = vld [vmem:[#allocation8 + $0x70] sm:$0xff]  ;;  %v886_v43 = vld [vmem:[#allocation8 + $0x98] sm:$0xff] }
  0x24   :  { %525 = vmatpush.bf16.msrb.mxu2 %v890_v27  ;;  %698 = vmatmul.msk.bf16.vlgmr.msra.gmra.mxu3 %vm165_vm0, %v106_v23  ;;  %v894_v44 = vld [vmem:[#allocation8 + $0xd8] sm:$0xff]  ;;  %v868_v45 = vld [vmem:[#allocation8 + $0x8] sm:$0xff]  ;;  %v885_v47 = vld [vmem:[#allocation8 + $0x90] sm:$0xff] }
  0x25   :  { %539 = vmatpush.bf16.msrb.mxu3 %v898_v28  ;;  %498 = vmatpush.bf16.msra.mxu0 %v873_v30  ;;  %v880_v46 = vld [vmem:[#allocation8 + $0x68] sm:$0xff]  ;;  %v893_v48 = vld [vmem:[#allocation8 + $0xd0] sm:$0xff]  ;;  %v867_v49 = vld [vmem:[#allocation8] sm:$0xff] }
  0x26   :  { %v879_v50 = vld [vmem:[#allocation8 + $0x60] sm:$0xff]  ;;  %v884_v51 = vld [vmem:[#allocation8 + $0x88] sm:$0xff]  ;;  %v878_v53 = vld [vmem:[#allocation8 + $0x58] sm:$0xff] }
  0x27   :  { %190 = vmatpush.bf16.msrb.mxu1 %v670_v29  ;;  %v892_v52 = vld [vmem:[#allocation8 + $0xc8] sm:$0xff]  ;;  %v883_v54 = vld [vmem:[#allocation8 + $0x80] sm:$0xff]  ;;  %v877_v56 = vld [vmem:[#allocation8 + $0x50] sm:$0xff] }
  0x28   :  { %526 = vmatpush.bf16.msrb.mxu2 %v889_v31  ;;  %v891_v55 = vld [vmem:[#allocation8 + $0xc0] sm:$0xff]  ;;  %v876_v57 = vld [vmem:[#allocation8 + $0x48] sm:$0xff]  ;;  %v115_v59 = vld [vmem:[#allocation7] sm:$0xf] }
  0x29   :  { %540 = vmatpush.bf16.msrb.mxu3 %v897_v32  ;;  %499 = vmatpush.bf16.msra.mxu0 %v872_v33  ;;  %v875_v58 = vld [vmem:[#allocation8 + $0x40] sm:$0xff]  ;;  %v117_v61 = vperm.slane %v115_v59, 0  ;;  %v120_v1 = vperm.slane %v115_v59, 3  ;;  %v119_v4 = vperm.slane %v115_v59, 2  ;;  %v118_v19 = vperm.slane %v115_v59, 1  ;;  %v906_v28 = vld [vmem:[#allocation10 + $0x38] sm:$0xff] }
  0x2a   :  { %v905_v29 = vld [vmem:[#allocation10 + $0x30] sm:$0xff]  ;;  %v904_v30 = vld [vmem:[#allocation10 + $0x28] sm:$0xff]  ;;  %v903_v31 = vld [vmem:[#allocation10 + $0x20] sm:$0xff] }
  0x2b   :  { %511 = vmatpush.bf16.msra.mxu1 %v882_v38  ;;  %v902_v32 = vld [vmem:[#allocation10 + $0x18] sm:$0xff]  ;;  %v901_v33 = vld [vmem:[#allocation10 + $0x10] sm:$0xff] }
  0x2c   :  { %527 = vmatpush.bf16.msrb.mxu2 %v888_v34  ;;  %v900_v34 = vld [vmem:[#allocation10 + $0x8] sm:$0xff] }
  0x2d   :  { %541 = vmatpush.bf16.msrb.mxu3 %v896_v35  ;;  %500 = vmatpush.bf16.msra.mxu0 %v871_v36  ;;  %v899_v35 = vld [vmem:[#allocation10] sm:$0xff] }
  0x2f   :  { %512 = vmatpush.bf16.msra.mxu1 %v881_v42 }
  0x30   :  { %528 = vmatpush.bf16.msrb.mxu2 %v887_v39 }
  0x31   :  { %501 = vmatpush.bf16.msra.mxu0 %v870_v37  ;;  %542 = vmatpush.bf16.msrb.mxu3 %v895_v40  ;;  %v924_v37 = vld [vmem:[%s1171_s4] ss:$0 sm:$0xff] }
  0x32   :  { %696 = vmatmul.msk.bf16.vlgmr.msrb.gmra.mxu1 %vm165_vm0, %v106_v23 }
  0x33   :  { %513 = vmatpush.bf16.msra.mxu1 %v880_v46 }
  0x34   :  { %529 = vmatpush.bf16.msrb.mxu2 %v886_v43 }
  0x35   :  { %502 = vmatpush.bf16.msra.mxu0 %v869_v41  ;;  %543 = vmatpush.bf16.msrb.mxu3 %v894_v44 }
  0x37   :  { %514 = vmatpush.bf16.msra.mxu1 %v879_v50 }
  0x38   :  { %530 = vmatpush.bf16.msrb.mxu2 %v885_v47 }
  0x39   :  { %503 = vmatpush.bf16.msra.mxu0 %v868_v45  ;;  %544 = vmatpush.bf16.msrb.mxu3 %v893_v48 }
  0x3b   :  { %515 = vmatpush.bf16.msra.mxu1 %v878_v53 }
  0x3c   :  { %531 = vmatpush.bf16.msrb.mxu2 %v884_v51 }
  0x3d   :  { %504 = vmatpush.bf16.msra.mxu0 %v867_v49  ;;  %545 = vmatpush.bf16.msrb.mxu3 %v892_v52 }
  0x3f   :  { %516 = vmatpush.bf16.msra.mxu1 %v877_v56 }
  0x40   :  { %532 = vmatpush.bf16.msrb.mxu2 %v883_v54 }
  0x41   :  { %546 = vmatpush.bf16.msrb.mxu3 %v891_v55  ;;  %624 = vmatpush.bf16.msrb.mxu0 %v906_v28 }
  0x43   :  { %517 = vmatpush.bf16.msra.mxu1 %v876_v57  ;;  %v925_v57 = vld [vmem:[%s1173_s6] ss:$0 sm:$0xff] }
  0x45   :  { %625 = vmatpush.bf16.msrb.mxu0 %v905_v29 }
  0x47   :  { %518 = vmatpush.bf16.msra.mxu1 %v875_v58 }
  0x49   :  { %626 = vmatpush.bf16.msrb.mxu0 %v904_v30 }
  0x4d   :  { %627 = vmatpush.bf16.msrb.mxu0 %v903_v31 }
  0x51   :  { %628 = vmatpush.bf16.msrb.mxu0 %v902_v32 }
  0x55   :  { %629 = vmatpush.bf16.msrb.mxu0 %v901_v33 }
  0x59   :  { %630 = vmatpush.bf16.msrb.mxu0 %v900_v34 }
  0x5d   :  { %631 = vmatpush.bf16.msrb.mxu0 %v899_v35 }
  0x9f   :  { %v178_v60 = vpop.f32.mrf.mxu1 }
  0xa0   :  { %v179_v62 = vadd.f32 %v178_v60, %v117_v61 }
  0xa2   :  { %v225_v5 = vmax.f32 %v179_v62, 0.0 }
  0xa6   :  { %v206_v63 = vpop.f32.mrf.mxu2 }
  0xa7   :  { %v220_v0 = vpop.f32.mrf.mxu3  ;;  %v180_v2 = vpop.f32.mrf.mxu1  ;;  %v207_v9 = vadd.f32 %v206_v63, %v119_v4 }
  0xa8   :  { %v181_v3 = vadd.f32 %v180_v2, %v117_v61  ;;  %v221_v7 = vadd.f32 %v220_v0, %v120_v1 }
  0xa9   :  { %v227_v16 = vmax.f32 %v207_v9, 0.0 }
  0xaa   :  { %v229_v6 = vmax.f32 %v181_v3, 0.0  ;;  %v228_v12 = vmax.f32 %v221_v7, 0.0 }
  0xac   :  { %v233_v8 = vpack.c.bf16 %v229_v6, %v225_v5 }
  0xae   :  { %v208_v10 = vpop.f32.mrf.mxu2  ;;  %505 = vmatmul.bf16.vlgmr.msra.gmra.mxu0 %v233_v8 }
  0xaf   :  { %v222_v11 = vpop.f32.mrf.mxu3  ;;  %v209_v13 = vadd.f32 %v208_v10, %v119_v4  ;;  %v192_v15 = vpop.f32.mrf.mxu1 }
  0xb0   :  { %v223_v14 = vadd.f32 %v222_v11, %v120_v1  ;;  %v193_v22 = vadd.f32 %v192_v15, %v118_v19 }
  0xb1   :  { %v231_v17 = vmax.f32 %v209_v13, 0.0 }
  0xb2   :  { %v232_v18 = vmax.f32 %v223_v14, 0.0  ;;  %v226_v25 = vmax.f32 %v193_v22, 0.0 }
  0xb3   :  { %v235_v20 = vpack.c.bf16 %v231_v17, %v227_v16 }
  0xb4   :  { %v236_v21 = vpack.c.bf16 %v232_v18, %v228_v12 }
  0xb5   :  { %533 = vmatmul.bf16.vlgmr.msrb.gmra.mxu2 %v235_v20 }
  0xb6   :  { %547 = vmatmul.bf16.vlgmr.msrb.gmra.mxu3 %v236_v21 }
  0xb7   :  { %v194_v23 = vpop.f32.mrf.mxu1 }
  0xb8   :  { %v195_v24 = vadd.f32 %v194_v23, %v118_v19 }
  0xba   :  { %v230_v26 = vmax.f32 %v195_v24, 0.0 }
  0xbc   :  { %v234_v27 = vpack.c.bf16 %v230_v26, %v226_v25 }
  0xbe   :  { %519 = vmatmul.bf16.vlgmr.msra.gmra.mxu1 %v234_v27 }
 0x12b   :  { %v506_v36 = vpop.f32.mrf.mxu0 }
 0x12c   :  { %v507_v40 = vadd.f32 %v924_v37, %v506_v36 }
 0x133   :  { %v508_v43 = vpop.f32.mrf.mxu0 }
 0x134   :  { %v509_v44 = vadd.f32 %v924_v37, %v508_v43 }
 0x138   :  { %v534_v38 = vpop.f32.mrf.mxu2 }
 0x139   :  { %v548_v41 = vpop.f32.mrf.mxu3 }
 0x13b   :  { %v520_v39 = vpop.f32.mrf.mxu1 }
 0x13c   :  { %v521_v42 = vadd.f32 %v520_v39, %v507_v40 }
 0x13e   :  { %v535_v45 = vadd.f32 %v534_v38, %v521_v42 }
 0x140   :  { %v536_v48 = vpop.f32.mrf.mxu2  ;;  %v549_v49 = vadd.f32 %v548_v41, %v535_v45 }
 0x141   :  { %v550_v51 = vpop.f32.mrf.mxu3 }
 0x142   :  { %v553_v53 = vmax.f32 %v549_v49, 0.0 }
 0x143   :  { %v522_v46 = vpop.f32.mrf.mxu1 }
 0x144   :  { %v523_v47 = vadd.f32 %v522_v46, %v509_v44 }
 0x146   :  { %v537_v50 = vadd.f32 %v536_v48, %v523_v47 }
 0x148   :  { %v551_v52 = vadd.f32 %v550_v51, %v537_v50 }
 0x14a   :  { %v554_v54 = vmax.f32 %v551_v52, 0.0 }
 0x14c   :  { %v555_v55 = vpack.c.bf16 %v554_v54, %v553_v53 }
 0x14e   :  { %632 = vmatmul.bf16.vlgmr.msrb.gmra.mxu0 %v555_v55 }
 0x1cb   :  { %v633_v56 = vpop.f32.mrf.mxu0 }
 0x1cc   :  { %v634_v59 = vadd.f32 %v925_v57, %v633_v56 }
 0x1d3   :  { %v635_v58 = vpop.f32.mrf.mxu0 }
 0x1d4   :  { %v636_v60 = vadd.f32 %v925_v57, %v635_v58 }
 0x1d6   :  { %v910_v61 = vpack.c.bf16 %v636_v60, %v634_v59 }
 0x1d8   :  { %911 = vst [vmem:[#allocation11] sm:$0xff] %v910_v61  }
 0x1d9   :  { %654 = dma.vmem_to_hbm [thread:$0]  %s647_s8, 128, %s649_s11, [#allocation4], %s1082_s13, %s1082_s13, %s1083_s14  }
 0x1da   :  { %1076 = dma.done.wait [#allocation4], 128  }
 0x1db   :  { %1077 = vsyncadd [#allocation4], 4294967168 }
 0x1dc   :  { %659 = vsyncpa [#allocation3], 1 }
 0x1dd   :  { %660 = vsyncpa [#allocation6], 1 }
 0x1de   :  { %661 = vsyncpa [#allocation9], 1 }
 0x1df   :  { %662 = vsyncpa [#allocation4], 1 }

</bundles_post_ra>
